<compile_context>
chip_gen: v6e
topology: v6e:2x2x1
jax: 0.10.0
libtpu: 0.0.40
codegen_flags: <defaults>
</compile_context>

<pallas_src>
import functools

import jax
import jax.numpy as jnp
from jax.experimental import pallas as pl
from jax.experimental.pallas import tpu as pltpu


# ------------------------------ sizing helpers --------------------------------

def _vmem_limit_bytes():
    """Generation-aware scoped-VMEM limit: ~half of physical VMEM, capped at
    64 MiB (v5e/v6e: 128 MiB phys -> 64 MiB; v7x: 64 MiB phys -> 32 MiB)."""
    try:
        cap = int(pltpu.get_tpu_info().vmem_capacity_bytes)
    except Exception:
        cap = 64 << 20
    return int(min(cap // 2, 64 << 20))


def _pick_tile(dim, target, align):
    """Largest divisor of `dim` that is <= target and a multiple of `align`
    (8 for sublane dims, 128 for lane dims).  If none exists, try the smallest
    aligned divisor above target; only then fall back to the full dim."""
    if dim <= target:
        return dim
    for t in range(min(target, dim), align - 1, -1):
        if dim % t == 0 and t % align == 0:
            return t
    for t in range(target + align, dim, align):
        if dim % t == 0:
            return t
    # TODO(synk): pl.cdiv + edge masking for dims with no aligned divisor.
    return dim


def _pick_head_tile(num_head, n_parallel_other, tq, lk, dh, vmem_limit):
    """Largest divisor of num_head whose per-step working set fits the budget,
    accounting for Pallas double-buffering (x2 on every pipelined block) and
    the in-kernel f32 score temporaries."""
    bf2, f4 = 2, 4

    def step_bytes(hb):
        q = hb * tq * dh * bf2
        kv = 2 * hb * lk * dh * bf2
        o = hb * tq * dh * bf2
        dist = hb * tq * lk * bf2
        tmp = 2 * hb * tq * lk * f4          # f32 score tile + exp headroom
        return 2 * (q + kv + o + dist) + tmp  # x2: double-buffered pipeline

    budget = int(vmem_limit * 0.75)
    hb = num_head
    while hb > 1 and (num_head % hb or step_bytes(hb) > budget):
        hb -= 1
    # v7x has 2 TensorCores: keep >= 2 iterations across the parallel axes so
    # dimension_semantics=("parallel", ...) can actually shard the grid.
    if n_parallel_other == 1 and num_head > 1 and num_head // hb < 2:
        hb = num_head // 2
        while num_head % hb:
            hb -= 1
    return max(hb, 1)


# ------------------------------- Pallas kernels --------------------------------

def _linear_acc_kernel(x_ref, w_ref, b_ref, o_ref, acc_ref):
    # x_ref: (tl, tk) bf16, w_ref: (tk, tn) bf16, b_ref: (1, tn) f32.
    k = pl.program_id(4)

    @pl.when(k == 0)
    def _init():
        acc_ref[...] = jnp.zeros_like(acc_ref)

    acc_ref[...] += jnp.dot(x_ref[...], w_ref[...],
                            preferred_element_type=jnp.float32)

    @pl.when(k == pl.num_programs(4) - 1)
    def _finalize():
        o_ref[...] = (acc_ref[...] + b_ref[...]).astype(o_ref.dtype)


def _linear_single_kernel(x_ref, w_ref, b_ref, o_ref):
    # Single reduction step: no accumulator scratch, no reduction grid axis.
    o_ref[...] = (jnp.dot(x_ref[...], w_ref[...],
                          preferred_element_type=jnp.float32)
                  + b_ref[...]).astype(o_ref.dtype)


def _attn_kernel(q_ref, k_ref, v_ref, o_ref, dist_ref, *, inv_scale):
    # q_ref: (hb, tq, dh) bf16; k_ref/v_ref: (hb, Lk, dh) bf16.
    # NOTE: torch's `dim_head ** 1 / 2` divides by dim_head/2 (precedence bug),
    # NOT sqrt(dim_head); replicated exactly via inv_scale = 2/dim_head, folded
    # into Q (tq*dh multiplies instead of tq*Lk on the scores).
    q = q_ref[...] * inv_scale                               # stays bf16
    # Contract K on its LAST axis — no explicit k.T / XLU transpose.
    s = jnp.einsum("hqd,hkd->hqk", q, k_ref[...],
                   preferred_element_type=jnp.float32)
    s = s - jnp.max(s, axis=-1, keepdims=True)
    s = jnp.exp(s)                                           # overwrite in place
    inv_denom = pl.reciprocal(jnp.sum(s, axis=-1, keepdims=True), approx=True)
    dist_ref[...] = (s * inv_denom).astype(dist_ref.dtype)   # bf16 writeback
    o_ref[...] = jnp.einsum("hqk,hkd->hqd", dist_ref[...], v_ref[...],
                            preferred_element_type=jnp.float32
                            ).astype(o_ref.dtype)


# --------------------------------- wrappers ------------------------------------

def stacked_linear(xs, ws, bs, *, out_dtype=jnp.bfloat16,
                   tile_l=512, tile_n=512, tile_k=512):
    """xs: (G, B, L, Din), ws: (G, Din, Dout), bs: (G, 1, Dout) -> (G, B, L, Dout).

    One pallas_call handles G independent linears (G=3 fuses Q/K/V, G=1 is the
    output projection).  Operands are cast to bf16 once here; accumulation is
    f32 in-kernel."""
    G, B, L, Din = xs.shape
    Dout = ws.shape[-1]
    xs = xs.astype(jnp.bfloat16)
    ws = ws.astype(jnp.bfloat16)
    bs = bs.astype(jnp.float32)

    tl = _pick_tile(L, tile_l, 8)
    tn = _pick_tile(Dout, tile_n, 128)
    tk = _pick_tile(Din, tile_k, 128)
    kt = Din // tk
    vmem_limit = _vmem_limit_bytes()
    out_shape = jax.ShapeDtypeStruct((G, B, L, Dout), out_dtype)

    if kt == 1:
        # Single reduction step -> no accumulator scratch, 4-D fully parallel grid.
        return pl.pallas_call(
            _linear_single_kernel,
            out_shape=out_shape,
            grid=(G, B, L // tl, Dout // tn),
            in_specs=[
                pl.BlockSpec((None, None, tl, tk), lambda g, b, i, j: (g, b, i, 0)),
                pl.BlockSpec((None, tk, tn), lambda g, b, i, j: (g, 0, j)),
                pl.BlockSpec((None, 1, tn), lambda g, b, i, j: (g, 0, j)),
            ],
            out_specs=pl.BlockSpec((None, None, tl, tn),
                                   lambda g, b, i, j: (g, b, i, j)),
            compiler_params=pltpu.CompilerParams(
                dimension_semantics=("parallel",) * 4,
                vmem_limit_bytes=vmem_limit,
            ),
        )(xs, ws, bs)

    return pl.pallas_call(
        _linear_acc_kernel,
        out_shape=out_shape,
        grid=(G, B, L // tl, Dout // tn, kt),
        in_specs=[
            pl.BlockSpec((None, None, tl, tk), lambda g, b, i, j, k: (g, b, i, k)),
            pl.BlockSpec((None, tk, tn), lambda g, b, i, j, k: (g, k, j)),
            pl.BlockSpec((None, 1, tn), lambda g, b, i, j, k: (g, 0, j)),
        ],
        out_specs=pl.BlockSpec((None, None, tl, tn),
                               lambda g, b, i, j, k: (g, b, i, j)),
        scratch_shapes=[pltpu.VMEM((tl, tn), jnp.float32)],
        compiler_params=pltpu.CompilerParams(
            dimension_semantics=("parallel", "parallel", "parallel",
                                 "parallel", "arbitrary"),
            vmem_limit_bytes=vmem_limit,
        ),
    )(xs, ws, bs)


def pallas_attention(qh, kh, vh, dim_head, *, tile_q=256,
                     dist_dtype=jnp.bfloat16):
    """qh: (B, H, Lq, dh), kh/vh: (B, H, Lk, dh) -> (attn bf16, distribution)."""
    B, H, Lq, dh = qh.shape
    Lk = kh.shape[2]
    qh = qh.astype(jnp.bfloat16)
    kh = kh.astype(jnp.bfloat16)
    vh = vh.astype(jnp.bfloat16)

    tq = _pick_tile(Lq, tile_q, 8)
    vmem_limit = _vmem_limit_bytes()
    hb = _pick_head_tile(H, B * (Lq // tq), tq, Lk, dh, vmem_limit)
    inv_scale = 2.0 / dim_head   # == 1 / (dim_head ** 1 / 2) per the torch quirk
    kernel = functools.partial(_attn_kernel, inv_scale=inv_scale)

    return pl.pallas_call(
        kernel,
        out_shape=(
            jax.ShapeDtypeStruct((B, H, Lq, dh), jnp.bfloat16),
            jax.ShapeDtypeStruct((B, H, Lq, Lk), dist_dtype),
        ),
        grid=(B, H // hb, Lq // tq),
        in_specs=[
            pl.BlockSpec((None, hb, tq, dh), lambda b, h, qi: (b, h, qi, 0)),
            pl.BlockSpec((None, hb, Lk, dh), lambda b, h, qi: (b, h, 0, 0)),
            pl.BlockSpec((None, hb, Lk, dh), lambda b, h, qi: (b, h, 0, 0)),
        ],
        out_specs=(
            pl.BlockSpec((None, hb, tq, dh), lambda b, h, qi: (b, h, qi, 0)),
            pl.BlockSpec((None, hb, tq, Lk), lambda b, h, qi: (b, h, qi, 0)),
        ),
        compiler_params=pltpu.CompilerParams(
            dimension_semantics=("parallel", "parallel", "parallel"),
            vmem_limit_bytes=vmem_limit,
        ),
    )(qh, kh, vh)


def dp_attention_forward(q_in, k_in, v_in, params, num_head):
    """Mirrors DP_Attention.forward exactly (including its reshape quirks)."""
    B, L, D = q_in.shape
    dim_head = D // num_head

    # Fused Q/K/V projection: one pallas_call over the stacked weights.
    xs = jnp.stack([q_in, k_in, v_in], axis=0)                   # (3, B, L, D)
    qkv = stacked_linear(xs, params["w_qkv"], params["b_qkv"],
                         out_dtype=jnp.bfloat16)                 # (3, B, L, D)
    Q, K, V = qkv[0], qkv[1], qkv[2]
    len_Q, len_K, len_V = Q.shape[1], K.shape[1], V.shape[1]

    # Exact torch semantics: straight row-major reshape
    # (NOT reshape(B, L, H, dh).transpose(1, 2)).
    Qh = Q.reshape(B, num_head, len_Q, dim_head)
    Kh = K.reshape(B, num_head, len_K, dim_head)
    Vh = V.reshape(B, num_head, len_V, dim_head)

    attn, attn_distribution = pallas_attention(Qh, Kh, Vh, dim_head)

    attn = attn.reshape(B, len_Q, num_head * dim_head)
    out = stacked_linear(attn[None], params["wo"][None], params["bo"][None],
                         out_dtype=jnp.float32)[0]
    return out, attn_distribution


# ------------------------------ pure-JAX reference ------------------------------

def reference_forward(q_in, k_in, v_in, params, num_head):
    def lin(x, w, b):
        return x @ w + b

    Q = lin(q_in, params["w_qkv"][0], params["b_qkv"][0])
    K = lin(k_in, params["w_qkv"][1], params["b_qkv"][1])
    V = lin(v_in, params["w_qkv"][2], params["b_qkv"][2])
    B, len_Q, D = Q.shape
    len_K, len_V = K.shape[1], V.shape[1]
    dh = D // num_head
    Qh = Q.reshape(B, num_head, len_Q, dh)
    Kh = K.reshape(B, num_head, len_K, dh)
    Vh = V.reshape(B, num_head, len_V, dh)
    s = jnp.einsum("bhqd,bhkd->bhqk", Qh, Kh) / (dh ** 1 / 2)
    p = jax.nn.softmax(s, axis=-1)
    attn = jnp.einsum("bhqk,bhkd->bhqd", p, Vh)
    attn = attn.reshape(B, len_Q, num_head * dh)
    out = lin(attn, params["wo"], params["bo"])
    return out, p


# ----------------------------------- main ----------------------------------------

if __name__ == "__main__":
    B, L, dim_model, num_head = 2, 8, 32, 4

    key = jax.random.PRNGKey(0)
    ks = jax.random.split(key, 11)

    def init_linear(kw, kb, din, dout):
        # Deterministic synthetic init (weights stored as (in, out) = W_torch.T).
        w = 0.1 * jax.random.normal(kw, (din, dout), jnp.float32)
        b = 0.1 * jax.random.normal(kb, (1, dout), jnp.float32)
        return w, b

    wq, bq = init_linear(ks[0], ks[1], dim_model, dim_model)
    wk, bk = init_linear(ks[2], ks[3], dim_model, dim_model)
    wv, bv = init_linear(ks[4], ks[5], dim_model, dim_model)
    wo, bo = init_linear(ks[6], ks[7], dim_model, dim_model)

    params = dict(
        w_qkv=jnp.stack([wq, wk, wv], axis=0),   # (3, D, D)
        b_qkv=jnp.stack([bq, bk, bv], axis=0),   # (3, 1, D)
        wo=wo, bo=bo,
    )

    q_in = jax.random.normal(ks[8], (B, L, dim_model), jnp.float32)
    k_in = jax.random.normal(ks[9], (B, L, dim_model), jnp.float32)
    v_in = jax.random.normal(ks[10], (B, L, dim_model), jnp.float32)

    out, dist = dp_attention_forward(q_in, k_in, v_in, params, num_head)
    out = jax.block_until_ready(out)
    dist = jax.block_until_ready(dist)

    ref_out, ref_dist = reference_forward(q_in, k_in, v_in, params, num_head)
    assert out.shape == (B, L, dim_model)
    assert dist.shape == (B, num_head, L, L)
    # bf16 matmul operands + bf16 distribution -> bf16-level tolerance vs the
    # pure-f32 reference.
    assert jnp.allclose(out, ref_out, rtol=3e-2, atol=3e-2)
    assert jnp.allclose(dist.astype(jnp.float32), ref_dist, rtol=3e-2, atol=3e-2)

    print("KERNEL_OK")
</pallas_src>

<mosaic_0001>
module attributes {stable_mosaic.version = 11 : i64} {
  func.func @_linear_single_kernel(%arg0: i32, %arg1: i32, %arg2: i32, %arg3: i32, %arg4: memref<1x1x8x32xbf16, #tpu.memory_space<vmem>>, %arg5: memref<1x32x32xbf16, #tpu.memory_space<vmem>>, %arg6: memref<1x1x32xf32, #tpu.memory_space<vmem>>, %arg7: memref<1x1x8x32xbf16, #tpu.memory_space<vmem>>) attributes {dimension_semantics = [#tpu.dimension_semantics<parallel>, #tpu.dimension_semantics<parallel>, #tpu.dimension_semantics<parallel>, #tpu.dimension_semantics<parallel>], iteration_bounds = array<i64: 3, 2, 1, 1>, scalar_prefetch = 0 : i64, scratch_operands = 0 : i64, tpu.core_type = #tpu.core_type<tc>, window_params = [{transform_indices = @transform_0, window_bounds = array<i64: 1, 1, 8, 32>}, {transform_indices = @transform_1, window_bounds = array<i64: 1, 32, 32>}, {transform_indices = @transform_2, window_bounds = array<i64: 1, 1, 32>}, {transform_indices = @transform_3, window_bounds = array<i64: 1, 1, 8, 32>}]} {
    %c0 = arith.constant 0 : index
    %c0_0 = arith.constant 0 : index
    %c0_1 = arith.constant 0 : index
    %c0_2 = arith.constant 0 : index
    %0 = vector.load %arg4[%c0, %c0_0, %c0_1, %c0_2] : memref<1x1x8x32xbf16, #tpu.memory_space<vmem>>, vector<1x1x8x32xbf16>
    %1 = vector.shape_cast %0 : vector<1x1x8x32xbf16> to vector<8x32xbf16>
    %c0_3 = arith.constant 0 : index
    %c0_4 = arith.constant 0 : index
    %c0_5 = arith.constant 0 : index
    %2 = vector.load %arg5[%c0_3, %c0_4, %c0_5] : memref<1x32x32xbf16, #tpu.memory_space<vmem>>, vector<1x32x32xbf16>
    %3 = vector.shape_cast %2 : vector<1x32x32xbf16> to vector<32x32xbf16>
    %cst = arith.constant dense<0.000000e+00> : vector<8x32xf32>
    %4 = tpu.matmul %1, %3, %cst {dimension_numbers = #tpu.dot_dimension_numbers<[1], [0], [0], [1], [0, 0, 1, 1], [], []>} : vector<8x32xbf16>, vector<32x32xbf16>, vector<8x32xf32> -> vector<8x32xf32>
    %c0_6 = arith.constant 0 : index
    %c0_7 = arith.constant 0 : index
    %c0_8 = arith.constant 0 : index
    %5 = vector.load %arg6[%c0_6, %c0_7, %c0_8] : memref<1x1x32xf32, #tpu.memory_space<vmem>>, vector<1x1x32xf32>
    %6 = vector.shape_cast %5 : vector<1x1x32xf32> to vector<1x32xf32>
    %7 = vector.broadcast %6 : vector<1x32xf32> to vector<8x32xf32>
    %8 = arith.addf %4, %7 : vector<8x32xf32>
    %9 = arith.truncf %8 : vector<8x32xf32> to vector<8x32xbf16>
    %c0_9 = arith.constant 0 : index
    %c0_10 = arith.constant 0 : index
    %c0_11 = arith.constant 0 : index
    %c0_12 = arith.constant 0 : index
    %10 = vector.load %arg7[%c0_9, %c0_10, %c0_11, %c0_12] : memref<1x1x8x32xbf16, #tpu.memory_space<vmem>>, vector<1x1x8x32xbf16>
    %11 = vector.shape_cast %10 : vector<1x1x8x32xbf16> to vector<8x32xbf16>
    %12 = vector.shape_cast %9 : vector<8x32xbf16> to vector<1x1x8x32xbf16>
    tpu.vector_store %arg7[%c0_9, %c0_10, %c0_11, %c0_12], %12 {strides = array<i32>} : memref<1x1x8x32xbf16, #tpu.memory_space<vmem>>, vector<1x1x8x32xbf16>,
    return
  }
  func.func @transform_0(%arg0: i32, %arg1: i32, %arg2: i32, %arg3: i32) -> (i32, i32, i32, i32) {
    %c0_i32 = arith.constant 0 : i32
    %c0_i32_0 = arith.constant 0 : i32
    return %arg0, %arg1, %arg2, %c0_i32 : i32, i32, i32, i32
  }
  func.func @transform_1(%arg0: i32, %arg1: i32, %arg2: i32, %arg3: i32) -> (i32, i32, i32) {
    %c0_i32 = arith.constant 0 : i32
    %c0_i32_0 = arith.constant 0 : i32
    return %arg0, %c0_i32, %arg3 : i32, i32, i32
  }
  func.func @transform_2(%arg0: i32, %arg1: i32, %arg2: i32, %arg3: i32) -> (i32, i32, i32) {
    %c0_i32 = arith.constant 0 : i32
    %c0_i32_0 = arith.constant 0 : i32
    return %arg0, %c0_i32, %arg3 : i32, i32, i32
  }
  func.func @transform_3(%arg0: i32, %arg1: i32, %arg2: i32, %arg3: i32) -> (i32, i32, i32, i32) {
    %c0_i32 = arith.constant 0 : i32
    return %arg0, %arg1, %arg2, %arg3 : i32, i32, i32, i32
  }
}

</mosaic_0001>

<bundles_post_ra>
// kernel: tpu_custom_call.1
= control target key start
LH: loop header
LB: loop body
LE: loop exit
PB: predicated region body
PF: predicated region fallthrough
CT: control target
= control target key end

     0   :  { %s1138_s0 = inlined_call_operand.hbm [shape: bf16[3,2,8,32], index: 0, kind: input, shape index: {}]   ;;  %s1139_s1 = inlined_call_operand.hbm [shape: bf16[3,32,32], index: 1, kind: input, shape index: {}]   ;;  %s1140_s2 = inlined_call_operand.vmem [shape: f32[3,1,32], index: 2, kind: input, shape index: {}]   ;;  %s1141_s3 = inlined_call_operand.hbm [shape: bf16[3,2,8,32], index: 3, kind: output, shape index: {}]  }
   0x1   :  { %1147 = sst [smem:[#allocation16_spill]] %s1138_s0 }
   0x2   :  { %8 = vsyncpa [#allocation3], 0 }
   0x3   :  { %10 = vsyncpa [#allocation3 + $0x1], 0 }
   0x4   :  { %11 = vsyncpa [#allocation6], 0 }
   0x5   :  { %13 = vsyncpa [#allocation6 + $0x1], 0 }
   0x6   :  { %14 = vsyncpa [#allocation4], 0 }
   0x7   :  { %16 = vsyncpa [#allocation4 + $0x1], 0  ;;  %s871_s12 = smov 0   ;;  %s873_s13 = smov 0  }
   0x8   :  { %s875_s14 = smov 0   ;;  %s877_s15 = smov 0  }
   0x9   :  { %s879_s16 = smov 0   ;;  %s881_s17 = smov 0  }
   0xa   :  { %s883_s18 = smov 0   ;;  %s885_s19 = smov 0  }
   0xb   :  { %s887_s20 = smov 0   ;;  %s889_s21 = smov 0  }
   0xc   :  { %s891_s22 = smov 0  }
   0xd LB: > { %1148 = sst [smem:[#allocation11_spill]] %s822_s17  ;;  %s514_s23 = sadd.s32 4294967295, %s842_s22   ;;  %s842_s22 = sphi %s891_s22, %s22_s22   ;;  %s838_s21 = sphi %s889_s21, %s1180_s21   ;;  %s834_s20 = sphi %s887_s20, %s1179_s20   ;;  %s830_s19 = sphi %s885_s19, %s1178_s19   ;;  %s826_s18 = sphi %s883_s18, %s1177_s18   ;;  %s822_s17 = sphi %s881_s17, %s1169_s17   ;;  %s818_s16 = sphi %s879_s16, %s1176_s16   ;;  %s814_s15 = sphi %s877_s15, %s1175_s15   ;;  %s810_s14 = sphi %s875_s14, %s1174_s14   ;;  %s806_s13 = sphi %s873_s13, %s1173_s13   ;;  %s802_s12 = sphi %s871_s12, %s1172_s12  }
   0xe   : > { %s515_s24 = sadd.s32 4294967294, %s842_s22   ;;  %s44_s25 = sadd.s32 1, %s834_s20 }
   0xf   : > { %s48_s26 = sadd.s32 1, %s838_s21  ;;  %p46_p0 = scmp.ge.s32.totalorder %s44_s25, 2 }
  0x10   : > { %s59_s27 = sadd.s32 1, %s822_s17  ;;  %p66_p1 = scmp.ne.s32.totalorder %s822_s17, %s818_s16 }
  0x11   : > { %p67_p2 = scmp.eq.s32.totalorder %s842_s22, 0  ;;  %s1182_s25 = smov (%p46_p0, %s44_s25), 0 }
  0x12   : > { %1149 = sst [smem:[#allocation12_spill]] %s1182_s25  ;;  %s1184_s26 = smov (!%p46_p0, %s48_s26), %s838_s21 }
  0x13   : > { %s53_s28 = ssub.s32 %s834_s20, %s1182_s25  ;;  %p944_p3 = por %p67_p2, %p66_p1 }
  0x14   : > { %p50_p4 = scmp.ge.s32.totalorder %s1184_s26, 3  ;;  %p72_p5 = scmp.ne.s32.totalorder %s818_s16, %s814_s15 }
  0x15   : > { %p950_p6 = scmp.eq.s32.totalorder %s514_s23, 0  ;;  %s87_s4 = sadd.s32 1, %s810_s14 }
  0x16   : > { %s1186_s26 = smov (%p50_p4, %s1184_s26), 0  ;;  %p94_p8 = scmp.ne.s32.totalorder %s810_s14, %s806_s13 }
  0x17   : > { %1152 = sst [smem:[#allocation13_spill]] %s1186_s26  ;;  %p962_p7 = por %p950_p6, %p72_p5 }
  0x18   : > { %s52_s6 = ssub.s32 %s838_s21, %s1186_s26  ;;  %p100_p9 = scmp.ne.s32.totalorder %s806_s13, %s802_s12 }
  0x19   : > { %s54_s7 = sor.u32 %s53_s28, %s52_s6  ;;  %p85_p10 = scmp.eq.s32.totalorder %s52_s6, 0 }
  0x1a   : > { %p57_p11 = scmp.eq.s32.totalorder %s54_s7, 0  ;;  %p974_p12 = por %p94_p8, %p67_p2 }
  0x1b   : > { %s979_s9 = scalar_select %p85_p10, %s810_s14, %s87_s4  }
  0x1c   : > { %s982_s10 = scalar_select %p57_p11, %s822_s17, %s59_s27  }
  0x1d   : > { %1155 = sst [smem:[#allocation14_spill]] %s979_s9  ;;  %p986_p13 = por %p100_p9, %p950_p6 }
  0x1e   : > { %1156 = sst [smem:[#allocation15_spill]] %s982_s10  ;;  %p158_p0 = scmp.eq.s32.totalorder %s514_s23, 5 }
  0x1f   : > { %s1157_s11 = scalar_select %p986_p13, 1, 0 }
  0x20   : > { %p164_p4 = scmp.eq.s32.totalorder %s515_s24, 5  ;;  %p993_p2 = por %p158_p0, %p66_p1 }
  0x21   : > { %p566_p8 = scmp.lt.s32.totalorder %s842_s22, 6  ;;  %s184_s28 = sand.u32 1, %s822_s17  }
  0x22   : > { %s1158_s12 = scalar_select %p993_p2, 1, 0 }
  0x23   : > { %p1001_p10 = por %p164_p4, %p72_p5  ;;  %s518_s30 = sshll.u32 %s184_s28, 2 }
  0x24   : > { %s519_s4 = sshll.u32 %s838_s21, 1  ;;  %s188_s7 = scalar_lea.vmem [#allocation2], %s518_s30 }
  0x25   : > { %s1159_s27 = scalar_select %p1001_p10, 1, 0 }
  0x26   : > { %s194_s6 = sadd.s32 %s834_s20, %s519_s4  ;;  %s198_s23 = sshll.u32 %s188_s7, 4  ;;  %s199_s23 = int_to_ptr.vmem [resolvable:$true] %s198_s23 }
  0x27   : > { %s520_s26 = sshll.u32 %s194_s6, 6  ;;  %s1160_s0 = sld [smem:[#allocation16_spill]] }
  0x28   : > { %p1013_p1 = pnand %p566_p8, %p944_p3  ;;  %p1019_p5 = pnand %p566_p8, %p974_p12 }
  0x29   : > { %p524_p6 = scmp.ge.s32.totalorder %s842_s22, 1  ;;  %p234_p9 = scmp.lt.s32.totalorder %s842_s22, 7 }
  0x2a   : > { %s185_s30 = scalar_lea.sflag [#allocation3], %s184_s28  ;;  %p664_p11 = pneg %p1013_p1 }
  0x2b   : > { %s675_s4 = scalar_lea.vmem %s199_s23, 64  ;;  %s844_s25 = smov [#allocation2]  }
  0x2c   : > { %p676_p0 = scmp.ne.s32.totalorder %s199_s23, %s675_s4 }
  0x2d   : > { %s196_s10 = scalar_lea.hbm %s1160_s0, %s520_s26  ;;  %s680_s26 = sshll.u32 %s844_s25, 4  ;;  %s681_s26 = int_to_ptr.vmem [resolvable:$false] %s680_s26 }
  0x2e   : > { %p678_p4 = pnand %p676_p0, %p664_p11  ;;  %s682_s29 = scalar_lea.vmem %s681_s26, 128 }
  0x2f   : > { %p683_p3 = scmp.lt.s32.totalorder %s199_s23, %s681_s26  ;;  %p684_p2 = scmp.lt.s32.totalorder %s682_s29, %s675_s4 }
  0x30   : > { %p679_p10 = pneg %p678_p4 }
  0x31   : > { %p685_p13 = por %p684_p2, %p683_p3 }
  0x33   : > { %p686_p12 = pnand %p685_p13, %p679_p10 }
  0x35   : > { %689 = shalt.err (!%p686_p12)
}
  0x36   : > { %558 = dma.hbm_to_vmem [thread:$0]  (!%p1013_p1), %s196_s10, 64, %s199_s23, %s185_s30  }
  0x37   : > { %p1033_p8 = pnand %p524_p6, %p234_p9  ;;  %s205_s28 = sand.u32 1, %s810_s14  }
  0x38   : > { %s537_s6 = sshll.u32 %s838_s21, 8  ;;  %s521_s7 = sshll.u32 %s205_s28, 4 }
  0x39   : > { %s216_s25 = scalar_lea.hbm %s1139_s1, %s537_s6  ;;  %s209_s9 = scalar_lea.vmem [#allocation5], %s521_s7 }
  0x3a   : > { %s217_s26 = sshll.u32 %s209_s9, 4  ;;  %s206_s29 = scalar_lea.sflag [#allocation6], %s205_s28  ;;  %s218_s26 = int_to_ptr.vmem [resolvable:$true] %s217_s26 }
  0x3b   : > { %p692_p13 = pneg %p1019_p5  ;;  %s703_s10 = scalar_lea.vmem %s218_s26, 256 }
  0x3c   : > { %p704_p2 = scmp.ne.s32.totalorder %s218_s26, %s703_s10  ;;  %s845_s23 = smov [#allocation5]  }
  0x3d   : > { %s708_s30 = sshll.u32 %s845_s23, 4  ;;  %s709_s30 = int_to_ptr.vmem [resolvable:$false] %s708_s30 }
  0x3e   : > { %p706_p10 = pnand %p704_p2, %p692_p13  ;;  %s710_s0 = scalar_lea.vmem %s709_s30, 512 }
  0x3f   : > { %p711_p6 = scmp.lt.s32.totalorder %s218_s26, %s709_s30  ;;  %p712_p9 = scmp.lt.s32.totalorder %s710_s0, %s703_s10 }
  0x40   : > { %p707_p1 = pneg %p706_p10 }
  0x41   : > { %p713_p11 = por %p712_p9, %p711_p6 }
  0x43   : > { %p714_p0 = pnand %p713_p11, %p707_p1 }
  0x45   : > { %717 = shalt.err (!%p714_p0)
}
  0x46   : > { %s846_s6 = smov 64   ;;  %s847_s7 = smov 4  }
  0x47   : > { %561 = dma.hbm_to_vmem [thread:$0]  (!%p1019_p5), %s216_s25, 256, %s218_s26, %s206_s29, %s846_s6, %s846_s6, %s847_s7  }
  0x48   : > { %238 = sbr.rel (%p1033_p8) target bundleno = 302 (0x12e), region = 32  ;;  %s1049_s28 = sand.u32 (!%p1033_p8), 1, %s818_s16  }
  0x49   : > { %s525_s24 = sshll.u32 (!%p1033_p8), %s1049_s28, 2  ;;  %s241_s0 = scalar_lea.sflag (!%p1033_p8), [#allocation3], %s1049_s28 }
  0x4a   : > { %s244_s4 = scalar_lea.vmem (!%p1033_p8), [#allocation2], %s525_s24 }
  0x4d   : > { %789 = dma.done.wait (%p962_p7), %s241_s0, 64  }
  0x4e   : > { %791 = vsyncadd (%p962_p7), %s241_s0, 4294967232  ;;  %s249_s17 = sand.u32 1, %s806_s13   ;;  %p1164_p5 = scmp.ne.s32.totalorder %s1157_s11, 0 }
  0x4f   : > { %s526_s8 = sshll.u32 %s249_s17, 4  ;;  %s250_s25 = scalar_lea.sflag [#allocation6], %s249_s17 }
  0x50   : > { %s253_s9 = scalar_lea.vmem [#allocation5], %s526_s8 }
  0x51   : > { %793 = dma.done.wait (%p1164_p5), %s250_s25, 256  }
  0x52   : > { %795 = vsyncadd (%p1164_p5), %s250_s25, 4294967040  ;;  %v848_v0 = vmov 0.0   ;;  %vm849_vm0 = vmmov 0   ;;  %v660_v1 = vld [vmem:[%s253_s9 + $0x8] sm:$0xff]   ;;  %v661_v2 = vld [vmem:[%s253_s9] sm:$0xff]   ;;  %vm318_vm1 = vcmask 261120  }
  0x53   : > { %541 = vmatprep.subr.bf16.mxu0 %v848_v0  ;;  %545 = vmatprep.mubr.msk.bf16.mxu0 %vm849_vm0, %v848_v0  ;;  %v294_v3 = vld [vmem:[%s244_s4] sm:$0xf]  ;;  %p287_p7 = scmp.lt.s32.totalorder %s830_s19, 2  ;;  %s533_s11 = sshll.u32 %s830_s19, 1  ;;  %vm363_vm2 = vcmask 257024  }
  0x54   : > { %542 = vmatpush3.bf16.msra.mxu0 %v660_v1  ;;  %s379_s23 = sadd.s32 %s826_s18, %s533_s11  ;;  %s286_s6 = scalar_lea.vmem [#allocation7], %s525_s24 }
  0x55   : > { %543 = vmatprep.subr.bf16.mxu0 %v848_v0  ;;  %s288_s5 = scalar_select %p287_p7, %s830_s19, 2 }
  0x56   : > { %s534_s30 = sshll.u32 %s379_s23, 6  ;;  %s383_s7 = sshll.u32 %s286_s6, 4  ;;  %s1078_s7 = int_to_ptr.vmem [resolvable:$true] %s383_s7 }
  0x57   : > { %s292_s10 = scalar_lea.vmem %s1140_s2, %s288_s5  ;;  %s1076_s19 = scalar_lea.hbm %s1141_s3, %s534_s30 }
  0x58   : > { %544 = vmatpush3.bf16.msra.mxu0 %v661_v2  ;;  %v528_v4 = vld [vmem:[%s292_s10] ss:$0 sm:$0xff]  ;;  %s366_s18 = scalar_lea.sflag [#allocation4], %s1049_s28  ;;  %s718_s24 = scalar_lea.vmem %s1078_s7, 64 }
  0x59   : > { %p719_p4 = scmp.ne.s32.totalorder %s1078_s7, %s718_s24  ;;  %p1165_p3 = scmp.ne.s32.totalorder %s1158_s12, 0 }
  0x5a   : > { %s850_s17 = smov [#allocation7]  }
  0x5b   : > { %546 = vmatmul.mubr.msk.bf16.vlgmr.msra.gmra.mxu0 %vm318_vm1, %v294_v3  ;;  %p720_p12 = pnand %p719_p4, %p1165_p3  ;;  %s722_s8 = sshll.u32 %s850_s17, 4  ;;  %s723_s8 = int_to_ptr.vmem [resolvable:$false] %s722_s8 }
  0x5c   : > { %s724_s25 = scalar_lea.vmem %s723_s8, 128  ;;  %p725_p13 = scmp.lt.s32.totalorder %s1078_s7, %s723_s8 }
  0x5d   : > { %p721_p8 = pneg %p720_p12  ;;  %p726_p2 = scmp.lt.s32.totalorder %s724_s25, %s718_s24 }
  0x5f   : > { %p727_p10 = por %p726_p2, %p725_p13 }
  0x61   : > { %p728_p1 = pnand %p727_p10, %p721_p8 }
 0x11b   : > { %v356_v5 = vpop.f32.mrf.mxu0 }
 0x11c   : > { %v357_v6 = vadd.f32 %v528_v4, %v356_v5 }
 0x11d   : > { %v547_v7 = vpop.f32.mrf.mxu0 }
 0x11e   : > { %v362_v8 = vpack.c.bf16 %v357_v6, %v357_v6 }
 0x11f   : > { %v359_v9 = vpop.f32.mrf.mxu0 }
 0x120   : > { %364 = vst.msk [vmem:[%s286_s6] sm:$0xf] %vm363_vm2, %v362_v8 }
 0x121   : > { %v548_v10 = vpop.f32.mrf.mxu0 }
 0x122   : > { %731 = shalt.err (!%p728_p1)
}
 0x123   : > { %s732_s9 = scalar_lea.hbm %s1076_s19, 64  ;;  %s736_s11 = scalar_lea.hbm %s1141_s3, 384 }
 0x124   : > { %p733_p6 = scmp.ne.s32.totalorder %s1076_s19, %s732_s9  ;;  %p737_p0 = scmp.lt.s32.totalorder %s1076_s19, %s1141_s3 }
 0x125   : > { %p738_p5 = scmp.lt.s32.totalorder %s736_s11, %s732_s9 }
 0x126   : > { %p734_p9 = pnand %p733_p6, %p1165_p3 }
 0x127   : > { %p739_p7 = por %p738_p5, %p737_p0 }
 0x128   : > { %p735_p11 = pneg %p734_p9 }
 0x12a   : > { %p740_p4 = pnand %p739_p7, %p735_p11 }
 0x12c   : > { %743 = shalt.err (!%p740_p4)
}
 0x12d   : > { %553 = dma.vmem_to_hbm [thread:$0]  (%p1165_p3), %s1078_s7, 64, %s1076_s19, %s366_s18  }
 0x12e PF: > { %p567_p12 = scmp.ge.s32.totalorder %s842_s22, 2  ;;  %s395_s10 = sand.u32 1, %s814_s15  }
 0x12f   : > { %p1166_p8 = scmp.ne.s32.totalorder %s1159_s27, 0  ;;  %s396_s23 = scalar_lea.sflag [#allocation4], %s395_s10 }
 0x131   : > { %p563_p13 = pnand %p567_p12, %p1166_p8 }
 0x133   : > { %p564_p2 = pneg %p563_p13 }
 0x135   : > { %797 = dma.done.wait (%p564_p2), %s396_s23, 64  }
 0x136   : > { %799 = vsyncadd (%p564_p2), %s396_s23, 4294967232  ;;  %s22_s22 = sadd.s32 1, %s842_s22   ;;  %s1167_s30 = sld [smem:[#allocation14_spill]] }
 0x137   : > { %p19_p10 = scmp.ge.s32.totalorder %s22_s22, 8   ;;  %s1168_s6 = sld [smem:[#allocation11_spill]] }
 0x138   : > { %s1169_s17 = sld [smem:[#allocation15_spill]]  ;;  %s1172_s12 = smov %s806_s13 }
 0x139   : > { %s1170_s7 = sld [smem:[#allocation12_spill]]  ;;  %s1173_s13 = smov %s810_s14 }
 0x13a   : > { %s1171_s0 = sld [smem:[#allocation13_spill]]  ;;  %s1175_s15 = smov %s818_s16 }
 0x13b   : > { %s1177_s18 = smov %s834_s20  ;;  %s1178_s19 = smov %s838_s21 }
 0x13c   : > { %s1174_s14 = smov %s1167_s30  ;;  %21 = sbr.rel (!%p19_p10) target bundleno = 13 (0xd), region = 93 }
 0x13d   : > { %s1176_s16 = smov %s1168_s6 }
 0x13f   : > { %s1179_s20 = smov %s1170_s7 }
 0x140   : > { %s1180_s21 = smov %s1171_s0 }
 0x141   :  { %401 = vsyncpa [#allocation3], 1 }
 0x142   :  { %403 = vsyncpa [#allocation3 + $0x1], 1 }
 0x143   :  { %404 = vsyncpa [#allocation6], 1 }
 0x144   :  { %406 = vsyncpa [#allocation6 + $0x1], 1 }
 0x145   :  { %407 = vsyncpa [#allocation4], 1 }
 0x146   :  { %409 = vsyncpa [#allocation4 + $0x1], 1 }

</bundles_post_ra>
